<compile_context>
chip_gen: v5e
topology: v5e:2x2
jax: 0.10.0
libtpu: 0.0.40
codegen_flags: <defaults>
</compile_context>

<pallas_src>
import jax
import jax.numpy as jnp
from jax.experimental import pallas as pl
from jax.experimental.pallas import tpu as pltpu


def _align_kernel(x_ref, w_ref, b_ref, o_ref):
    # x_ref: (bN, Cin, T)  w_ref: (Ct, Cin)  b_ref: (Ct, 1)  o_ref: (bN, Ct, T)
    w = w_ref[...]
    b = b_ref[...]

    def one_image(i, carry):
        acc = jnp.dot(w, x_ref[i], preferred_element_type=jnp.float32)
        o_ref[i] = (acc + b).astype(o_ref.dtype)
        return carry

    n_imgs = x_ref.shape[0]
    if n_imgs <= 8:                       # static: fully unroll small blocks
        for i in range(n_imgs):
            one_image(i, 0)
    else:
        jax.lax.fori_loop(0, n_imgs, one_image, 0)


def _vmem_capacity_bytes():
    try:
        return int(pltpu.get_tpu_info().vmem_capacity_bytes)
    except Exception:
        return 64 * 1024 * 1024           # conservative: v7x per-TC VMEM


def align_forward(x_nchw, weight, bias, *, compute_dtype=None, max_tile_hw=65536):
    """1x1 conv (Align.forward).

    x_nchw: (N, Cin, H, W)
    weight: (Cout, Cin, 1, 1)   (PyTorch Conv2d layout)
    bias:   (Cout,)
    compute_dtype: optionally cast x/W (e.g. jnp.bfloat16) at the kernel
        boundary; accumulation stays f32 and the output keeps x's dtype.
        Only a net HBM win when the cast fuses into the producer or the
        inputs are already narrow.
    returns (N, Cout, H, W) in x's dtype.
    """
    N, Cin, H, W = x_nchw.shape
    Cout = weight.shape[0]
    HW = H * W
    out_dtype = x_nchw.dtype

    cdtype = jnp.dtype(compute_dtype) if compute_dtype is not None else jnp.dtype(out_dtype)
    cb = cdtype.itemsize
    ob = jnp.dtype(out_dtype).itemsize

    # NCHW is already (N, Cin, H*W) in memory: pure reshape, no transpose.
    x = x_nchw.reshape(N, Cin, HW).astype(cdtype)
    w_mat = weight.reshape(Cout, Cin).astype(cdtype)
    b_mat = bias.reshape(Cout, 1).astype(jnp.float32)

    # Large-channel path: tile Cout when the weight / output-channel block
    # would otherwise crowd out the spatial tile.
    if Cout > 256 and Cout * Cin * cb > (4 << 20):
        tile_cout = 256
    else:
        tile_cout = Cout
    # TODO(synk): add a Cin (reduction) grid axis with an f32 VMEM accumulator
    # (init/finalize via pl.when) when (tile_cout, Cin) weight tiles get big.

    # --- per-step size: generation-aware VMEM budget ------------------------
    vmem_cap = _vmem_capacity_bytes()
    budget = vmem_cap // 3                 # ~21 MiB/step on v7x, ~42 MiB v5e/v6e

    per_lane = 2 * (Cin * cb + tile_cout * ob)        # double-buffered in + out
    hw_need = pl.cdiv(HW, 128) * 128
    tile_hw = max(128, (budget // per_lane) // 128 * 128)
    tile_hw = min(tile_hw, max_tile_hw, hw_need)

    # If one tile already covers a whole image, block several batch images per
    # grid step so per-step DMA bytes stay large enough to amortize the fixed
    # per-step pipeline overhead.
    if tile_hw >= hw_need and N > 1:
        bN = max(1, budget // (per_lane * tile_hw))
        bN = int(min(bN, N, 256))
    else:
        bN = 1

    hw_tiles = pl.cdiv(HW, tile_hw)
    n_blocks = pl.cdiv(N, bN)
    co_tiles = pl.cdiv(Cout, tile_cout)

    # Grid order: largest parallel axis first (v7x megacore balance).
    if hw_tiles >= n_blocks:
        grid = (hw_tiles, n_blocks, co_tiles)
        x_map = lambda j, nb, co: (nb, 0, j)
        o_map = lambda j, nb, co: (nb, co, j)
    else:
        grid = (n_blocks, hw_tiles, co_tiles)
        x_map = lambda nb, j, co: (nb, 0, j)
        o_map = lambda nb, j, co: (nb, co, j)
    w_map = lambda a, b_, co: (co, 0)
    bias_map = lambda a, b_, co: (co, 0)

    cost = pl.CostEstimate(
        flops=2 * N * HW * Cin * Cout,
        transcendentals=0,
        bytes_accessed=(N * Cin * HW * cb + Cout * Cin * cb + Cout * 4
                        + N * Cout * HW * ob),
    )

    vmem_needed = (2 * bN * tile_hw * (Cin * cb + tile_cout * ob)
                   + 2 * (tile_cout * Cin * cb + tile_cout * 4))
    vmem_cap_limit = (vmem_cap * 3) // 4              # 48 MiB on v7x
    vmem_limit = int(min(vmem_cap_limit, max(vmem_needed + (2 << 20), 16 << 20)))

    # TODO(synk): weight/bias could use pipeline_mode=pl.Buffered(1) (constant
    # index_map) to drop their unused second VMEM buffer; negligible here.
    out = pl.pallas_call(
        _align_kernel,
        out_shape=jax.ShapeDtypeStruct((N, Cout, HW), out_dtype),
        grid_spec=pltpu.PrefetchScalarGridSpec(
            num_scalar_prefetch=0,
            grid=grid,
            in_specs=[
                pl.BlockSpec((bN, Cin, tile_hw), x_map),
                pl.BlockSpec((tile_cout, Cin), w_map),
                pl.BlockSpec((tile_cout, 1), bias_map),
            ],
            out_specs=pl.BlockSpec((bN, tile_cout, tile_hw), o_map),
        ),
        compiler_params=pltpu.CompilerParams(
            dimension_semantics=("parallel", "parallel", "parallel"),
            vmem_limit_bytes=vmem_limit,
        ),
        cost_estimate=cost,
    )(x, w_mat, b_mat)

    return out.reshape(N, Cout, H, W)


if __name__ == "__main__":
    key = jax.random.PRNGKey(0)
    kx, kw, kb = jax.random.split(key, 3)

    N, Cin, Cout, Hs, Ws = 2, 4, 8, 16, 16

    x = jax.random.normal(kx, (N, Cin, Hs, Ws), dtype=jnp.float32)
    # Deterministic synthetic parameters (Conv2d(in, out, k=1) shapes).
    weight = jax.random.normal(kw, (Cout, Cin, 1, 1), dtype=jnp.float32) * 0.1
    bias = jax.random.normal(kb, (Cout,), dtype=jnp.float32) * 0.1

    y = align_forward(x, weight, bias)
    jax.block_until_ready(y)

    # Reference in plain JAX (channel mixing einsum + bias).
    y_ref = jnp.einsum("nchw,oc->nohw", x, weight.reshape(Cout, Cin)) + bias[
        None, :, None, None
    ]
    assert y.shape == (N, Cout, Hs, Ws)
    assert jnp.allclose(y, y_ref, atol=1e-5, rtol=1e-5)

    # Exercise the optional bf16 data path (f32 accumulate); looser tolerance.
    y_bf16 = align_forward(x, weight, bias, compute_dtype=jnp.bfloat16)
    jax.block_until_ready(y_bf16)
    assert jnp.allclose(y_bf16, y_ref, atol=5e-2, rtol=5e-2)

    print("KERNEL_OK")
</pallas_src>

<mosaic_0001>
module attributes {stable_mosaic.version = 11 : i64} {
  func.func @_align_kernel(%arg0: i32, %arg1: i32, %arg2: i32, %arg3: memref<2x4x256xf32, #tpu.memory_space<vmem>>, %arg4: memref<8x4xf32, #tpu.memory_space<vmem>>, %arg5: memref<8x1xf32, #tpu.memory_space<vmem>>, %arg6: memref<2x8x256xf32, #tpu.memory_space<vmem>>) attributes {dimension_semantics = [#tpu.dimension_semantics<parallel>, #tpu.dimension_semantics<parallel>, #tpu.dimension_semantics<parallel>], iteration_bounds = array<i64: 1, 1, 1>, scalar_prefetch = 0 : i64, scratch_operands = 0 : i64, tpu.core_type = #tpu.core_type<tc>, window_params = [{transform_indices = @transform_0, window_bounds = array<i64: 2, 4, 256>}, {transform_indices = @transform_1, window_bounds = array<i64: 8, 4>}, {transform_indices = @transform_2, window_bounds = array<i64: 8, 1>}, {transform_indices = @transform_3, window_bounds = array<i64: 2, 8, 256>}]} {
    %c0 = arith.constant 0 : index
    %c0_0 = arith.constant 0 : index
    %0 = vector.load %arg4[%c0, %c0_0] : memref<8x4xf32, #tpu.memory_space<vmem>>, vector<8x4xf32>
    %c0_1 = arith.constant 0 : index
    %c0_2 = arith.constant 0 : index
    %1 = vector.load %arg5[%c0_1, %c0_2] : memref<8x1xf32, #tpu.memory_space<vmem>>, vector<8x1xf32>
    %c0_3 = arith.constant 0 : index
    %c0_4 = arith.constant 0 : index
    %c0_5 = arith.constant 0 : index
    %2 = vector.load %arg3[%c0_3, %c0_4, %c0_5] : memref<2x4x256xf32, #tpu.memory_space<vmem>>, vector<1x4x256xf32>
    %3 = vector.shape_cast %2 : vector<1x4x256xf32> to vector<4x256xf32>
    %cst = arith.constant dense<0.000000e+00> : vector<8x256xf32>
    %4 = tpu.matmul %0, %3, %cst {dimension_numbers = #tpu.dot_dimension_numbers<[1], [0], [0], [1], [0, 0, 1, 1], [], []>} : vector<8x4xf32>, vector<4x256xf32>, vector<8x256xf32> -> vector<8x256xf32>
    %5 = vector.broadcast %1 : vector<8x1xf32> to vector<8x256xf32>
    %6 = arith.addf %4, %5 : vector<8x256xf32>
    %c0_6 = arith.constant 0 : index
    %c0_7 = arith.constant 0 : index
    %c0_8 = arith.constant 0 : index
    %7 = vector.load %arg6[%c0_6, %c0_7, %c0_8] : memref<2x8x256xf32, #tpu.memory_space<vmem>>, vector<1x8x256xf32>
    %8 = vector.shape_cast %7 : vector<1x8x256xf32> to vector<8x256xf32>
    %9 = vector.shape_cast %6 : vector<8x256xf32> to vector<1x8x256xf32>
    tpu.vector_store %arg6[%c0_6, %c0_7, %c0_8], %9 {strides = array<i32>} : memref<2x8x256xf32, #tpu.memory_space<vmem>>, vector<1x8x256xf32>,
    %c1 = arith.constant 1 : index
    %c0_9 = arith.constant 0 : index
    %c0_10 = arith.constant 0 : index
    %10 = vector.load %arg3[%c1, %c0_9, %c0_10] : memref<2x4x256xf32, #tpu.memory_space<vmem>>, vector<1x4x256xf32>
    %11 = vector.shape_cast %10 : vector<1x4x256xf32> to vector<4x256xf32>
    %cst_11 = arith.constant dense<0.000000e+00> : vector<8x256xf32>
    %12 = tpu.matmul %0, %11, %cst_11 {dimension_numbers = #tpu.dot_dimension_numbers<[1], [0], [0], [1], [0, 0, 1, 1], [], []>} : vector<8x4xf32>, vector<4x256xf32>, vector<8x256xf32> -> vector<8x256xf32>
    %13 = vector.broadcast %1 : vector<8x1xf32> to vector<8x256xf32>
    %14 = arith.addf %12, %13 : vector<8x256xf32>
    %c1_12 = arith.constant 1 : index
    %c0_13 = arith.constant 0 : index
    %c0_14 = arith.constant 0 : index
    %15 = vector.load %arg6[%c1_12, %c0_13, %c0_14] : memref<2x8x256xf32, #tpu.memory_space<vmem>>, vector<1x8x256xf32>
    %16 = vector.shape_cast %15 : vector<1x8x256xf32> to vector<8x256xf32>
    %17 = vector.shape_cast %14 : vector<8x256xf32> to vector<1x8x256xf32>
    tpu.vector_store %arg6[%c1_12, %c0_13, %c0_14], %17 {strides = array<i32>} : memref<2x8x256xf32, #tpu.memory_space<vmem>>, vector<1x8x256xf32>,
    return
  }
  func.func @transform_0(%arg0: i32, %arg1: i32, %arg2: i32) -> (i32, i32, i32) {
    %c0_i32 = arith.constant 0 : i32
    %c0_i32_0 = arith.constant 0 : i32
    return %arg1, %c0_i32, %arg0 : i32, i32, i32
  }
  func.func @transform_1(%arg0: i32, %arg1: i32, %arg2: i32) -> (i32, i32) {
    %c0_i32 = arith.constant 0 : i32
    %c0_i32_0 = arith.constant 0 : i32
    return %arg2, %c0_i32 : i32, i32
  }
  func.func @transform_2(%arg0: i32, %arg1: i32, %arg2: i32) -> (i32, i32) {
    %c0_i32 = arith.constant 0 : i32
    %c0_i32_0 = arith.constant 0 : i32
    return %arg2, %c0_i32 : i32, i32
  }
  func.func @transform_3(%arg0: i32, %arg1: i32, %arg2: i32) -> (i32, i32, i32) {
    %c0_i32 = arith.constant 0 : i32
    return %arg1, %arg2, %arg0 : i32, i32, i32
  }
}

</mosaic_0001>

<bundles_post_ra>
// kernel: tpu_custom_call.1
= control target key start
LH: loop header
LB: loop body
LE: loop exit
PB: predicated region body
PF: predicated region fallthrough
CT: control target
= control target key end

     0   :  { %v189_v1 = vmov 0   ;;  %s228_s0 = inlined_call_operand.vmem [shape: f32[2,4,256], index: 0, kind: input, shape index: {}]   ;;  %s229_s1 = inlined_call_operand.vmem [shape: f32[8,4], index: 1, kind: input, shape index: {}]   ;;  %s230_s2 = inlined_call_operand.vmem [shape: f32[8,1], index: 2, kind: input, shape index: {}]   ;;  %s231_s3 = inlined_call_operand.hbm [shape: f32[2,8,256], index: 3, kind: output, shape index: {}]  }
   0x1   :  { %v17_v0 = vld [vmem:[%s228_s0] sm:$0xff]  ;;  %162 = vset.pattern.permute.xlu0 %v189_v1 }
   0x2   :  { %24 = vst [vmem:[#allocation1] ss:$2 sm:$0xff] %v17_v0  ;;  %v16_v2 = vld [vmem:[%s230_s2] sm:$0xff] }
   0x3   :  { %8 = vsyncpa [#allocation3], 0  ;;  %20 = vperm.xlu0 %162, %v16_v2   ;;  %v153_v3 = vld [vmem:[%s228_s0 + $0x8] sm:$0xff]  ;;  %vm31_vm0 = vcmask 1043456   ;;  %v15_v6 = vld [vmem:[%s229_s1] sm:$0xff]  ;;  %vm27_vm1 = vcmask 31744  }
   0x4   :  { %s190_s0 = smov [#allocation2]   ;;  %s137_s21 = sshll.u32 %s231_s3, 4  ;;  %s138_s21 = int_to_ptr.hbm [resolvable:$true] %s137_s21 }
   0x5   :  { %s135_s1 = sshll.u32 %s190_s0, 4  ;;  %s191_s22 = smov 256   ;;  %s136_s1 = int_to_ptr.vmem [resolvable:$true] %s135_s1 }
   0x6   :  { %s192_s23 = smov 16  }
   0x9   :  { %v25_v4 = vld.sshfl [vmem:[#allocation1] sm:$0xff pattern:$0x75316420]  ;;  %v26_v5 = vld.sshfl [vmem:[#allocation1 + $0x8] sm:$0xff pattern:$0x75316420] }
   0xa   :  { %81 = vst [vmem:[#allocation1] ss:$2 sm:$0xff] %v153_v3  ;;  %149 = vmatpush.msk.msra.mxu0 %vm31_vm0, %v25_v4  ;;  %151 = vmatpush.msk.msra.mxu1 %vm31_vm0, %v26_v5 }
   0xb   :  { %150 = vmatmul.msk.f32.vlgmr.msra.gmra.mxu0 %vm27_vm1, %v15_v6  ;;  %152 = vmatmul.msk.f32.vlgmr.msra.gmra.mxu1 %vm27_vm1, %v15_v6 }
  0x11   :  { %v82_v7 = vld.sshfl [vmem:[#allocation1] sm:$0xff pattern:$0x75316420]  ;;  %v83_v8 = vld.sshfl [vmem:[#allocation1 + $0x8] sm:$0xff pattern:$0x75316420] }
  0x12   :  { %154 = vmatpush.msk.msra.mxu2 %vm31_vm0, %v82_v7  ;;  %156 = vmatpush.msk.msra.mxu3 %vm31_vm0, %v83_v8 }
  0x13   :  { %155 = vmatmul.msk.f32.vlgmr.msra.gmra.mxu2 %vm27_vm1, %v15_v6  ;;  %157 = vmatmul.msk.f32.vlgmr.msra.gmra.mxu3 %vm27_vm1, %v15_v6 }
  0x75   :  { %v21_v9 = vpop.permute.xlu0 %20 }
  0x88   :  { %v53_v10 = vpop.f32.mrf.mxu0  ;;  %v73_v11 = vpop.f32.mrf.mxu1 }
  0x89   :  { %v54_v12 = vadd.f32 %v53_v10, %v21_v9  ;;  %v74_v13 = vadd.f32 %v73_v11, %v21_v9 }
  0x8b   :  { %76 = vst [vmem:[#allocation2] sm:$0xff] %v54_v12 }
  0x8c   :  { %77 = vst [vmem:[#allocation2 + $0x8] sm:$0xff] %v74_v13 }
  0x96   :  { %v105_v14 = vpop.f32.mrf.mxu2  ;;  %v125_v15 = vpop.f32.mrf.mxu3 }
  0x97   :  { %v106_v16 = vadd.f32 %v105_v14, %v21_v9  ;;  %v126_v17 = vadd.f32 %v125_v15, %v21_v9 }
  0x99   :  { %129 = vst [vmem:[#allocation2 + $0x10] sm:$0xff] %v106_v16 }
  0x9a   :  { %130 = vst [vmem:[#allocation2 + $0x18] sm:$0xff] %v126_v17 }
  0x9b   :  { %143 = dma.vmem_to_hbm [thread:$0]  %s136_s1, 512, %s138_s21, [#allocation3], %s191_s22, %s191_s22, %s192_s23  }
  0x9c   :  { %187 = dma.done.wait [#allocation3], 512  }
  0x9d   :  { %188 = vsyncadd [#allocation3], 4294966784 }
  0x9e   :  { %148 = vsyncpa [#allocation3], 1 }

</bundles_post_ra>
